<compile_context>
chip_gen: v7x
topology: tpu7x:2x2x1
jax: 0.10.0
libtpu: 0.0.40
codegen_flags: <defaults>
</compile_context>

<pallas_src>
import functools

import jax
import jax.numpy as jnp
from jax.experimental import pallas as pl
from jax.experimental.pallas import tpu as pltpu


def _round_up(a, m):
    return ((a + m - 1) // m) * m


def _lateral_kernel(*refs, num_layers, activation, norm, eps, compute_dtype,
                    pack, d_real, d_seg):
    """One grid step over a (tm, Dp) tile of packed rows.

    refs layout (inputs then output):
      norm=False:          w, b, x, o
      norm=True, pack==1:  w, b, gamma, beta, x, o
      norm=True, pack>1:   w, b, gamma, beta, ones_blockdiag, x, o

    w: (L, Dp, Dp) in (in, out) layout (block-diagonal when packed), compute_dtype.
    b: (L, 1, Dp) f32.  gamma/beta: (1, Dp) f32.  ones: (Dp, Dp) f32 block-diag.
    """
    if norm:
        if pack > 1:
            w_ref, b_ref, g_ref, bt_ref, ones_ref, x_ref, o_ref = refs
        else:
            w_ref, b_ref, g_ref, bt_ref, x_ref, o_ref = refs
            ones_ref = None
    else:
        w_ref, b_ref, x_ref, o_ref = refs
        g_ref = bt_ref = ones_ref = None

    x = x_ref[...]
    h = x.astype(jnp.float32)
    dp = h.shape[-1]

    need_mask = norm and (d_seg != d_real)
    if need_mask:
        lane = jax.lax.broadcasted_iota(jnp.int32, (1, dp), 1)
        feat_mask = ((lane % d_seg) < d_real).astype(jnp.float32)

    inv_d = 1.0 / float(d_real)

    for l in range(num_layers):
        # NN matmul: weights are already (in, out) -> no in-kernel transpose.
        lhs = h.astype(compute_dtype)              # no-op when compute_dtype == f32
        h = jnp.dot(lhs, w_ref[l], preferred_element_type=jnp.float32)
        h = h + b_ref[l]                           # bias is f32 (1, Dp)

        if activation == "Tanh":
            h = jnp.tanh(h)                        # EUP, f32
        else:                                      # LeakyReLU (slope 0.01)
            h = jnp.maximum(h, 0.01 * h)

        if norm:
            if pack > 1:
                # Segment-wise LayerNorm via block-diagonal ones matmul (MXU),
                # keeping the tile lane-dense at 128 lanes.
                ones = ones_ref[...]
                mean = jnp.dot(h, ones, preferred_element_type=jnp.float32) * inv_d
                centered = h - mean
                if need_mask:
                    centered = centered * feat_mask
                var = jnp.dot(centered * centered, ones,
                              preferred_element_type=jnp.float32) * inv_d
                h = centered * jax.lax.rsqrt(var + eps)
            else:
                s = jnp.sum(h, axis=-1, keepdims=True)
                mean = s * inv_d
                centered = h - mean
                if need_mask:
                    centered = centered * feat_mask
                var = jnp.sum(centered * centered, axis=-1, keepdims=True) * inv_d
                h = centered * jax.lax.rsqrt(var + eps)
            h = h * g_ref[...] + bt_ref[...]

    o_ref[...] = (h + x.astype(jnp.float32)).astype(o_ref.dtype)


def lateral_block(x, weights, biases, *, activation="Tanh", norm=False,
                  gamma=None, beta=None, row_tile=1024, compute_dtype=None):
    """x: (B, N, D); weights: (L, D, D) in PyTorch Linear (out, in) layout;
    biases: (L, D); gamma/beta: (D,) when norm=True."""
    B, N, D = x.shape
    L = weights.shape[0]
    assert weights.shape == (L, D, D) and biases.shape == (L, D)
    if activation not in ("Tanh", "LeakyReLU"):
        raise ValueError("Invalid activation function")
    if norm:
        assert gamma is not None and beta is not None

    if compute_dtype is None:
        compute_dtype = jnp.bfloat16 if x.dtype == jnp.bfloat16 else jnp.float32

    M = B * N
    itemsize = jnp.dtype(x.dtype).itemsize
    sub = max(8, 32 // itemsize)                   # sublane multiple: 8 f32, 16 bf16

    # ---- lane-dense feature padding & row packing -------------------------------
    if D < 128:
        d_seg = 1
        while d_seg < D:
            d_seg *= 2                             # smallest pow2 >= D (divides 128)
        pack = 128 // d_seg
    else:
        d_seg = _round_up(D, 128)
        pack = 1
    Dp = pack * d_seg

    # ---- constant operands (host-side prep: pad, transpose, block-diag, cast) ---
    if d_seg != D:
        w_pad = jnp.pad(weights, ((0, 0), (0, d_seg - D), (0, d_seg - D)))
        b_pad = jnp.pad(biases, ((0, 0), (0, d_seg - D)))
    else:
        w_pad, b_pad = weights, biases
    wT = jnp.swapaxes(w_pad, 1, 2)                 # (L, in, out)
    if pack > 1:
        eye = jnp.eye(pack, dtype=wT.dtype)
        w_op = jnp.einsum("pq,lij->lpiqj", eye, wT).reshape(L, Dp, Dp)
    else:
        w_op = wT
    w_op = w_op.astype(compute_dtype)              # narrow resident VMEM footprint
    b_op = jnp.tile(b_pad.astype(jnp.float32), (1, pack)).reshape(L, 1, Dp)

    if norm:
        g = gamma.astype(jnp.float32)
        bt = beta.astype(jnp.float32)
        if d_seg != D:
            g = jnp.pad(g, (0, d_seg - D))
            bt = jnp.pad(bt, (0, d_seg - D))
        g_op = jnp.tile(g, (pack,)).reshape(1, Dp)
        bt_op = jnp.tile(bt, (pack,)).reshape(1, Dp)
        if pack > 1:
            ones_op = jnp.kron(jnp.eye(pack, dtype=jnp.float32),
                               jnp.ones((d_seg, d_seg), jnp.float32))

    # ---- row tiling (pad instead of asserting divisibility) ---------------------
    Mp = -(-M // pack)                             # packed rows needed
    tm = max(sub, min(_round_up(row_tile, sub),
                      _round_up(max(Mp // 8, 1), sub)))   # keep >= ~8 grid steps
    Mp_pad = _round_up(Mp, tm)
    M_rows = Mp_pad * pack

    x2 = x.reshape(M, D)
    if d_seg != D:
        x2 = jnp.pad(x2, ((0, 0), (0, d_seg - D)))
    if M_rows != M:
        x2 = jnp.pad(x2, ((0, M_rows - M), (0, 0)))
    xp = x2.reshape(Mp_pad, Dp)

    # ---- generation-aware VMEM limit --------------------------------------------
    vmem_limit = 48 * 1024 * 1024
    try:
        cap = int(pltpu.get_tpu_info().vmem_capacity_bytes)
        vmem_limit = max(32 * 1024 * 1024, min(vmem_limit, cap // 2))
    except Exception:
        pass                                       # keep 48 MiB fallback

    kernel = functools.partial(
        _lateral_kernel,
        num_layers=L, activation=activation, norm=norm, eps=1e-5,
        compute_dtype=compute_dtype, pack=pack, d_real=D, d_seg=d_seg)

    def _run(single_buffer_consts):
        const_kw = {}
        if single_buffer_consts:
            const_kw = dict(pipeline_mode=pl.Buffered(1))
        in_specs = [
            pl.BlockSpec((L, Dp, Dp), lambda i: (0, 0, 0), **const_kw),   # weights
            pl.BlockSpec((L, 1, Dp), lambda i: (0, 0, 0), **const_kw),    # biases
        ]
        operands = [w_op, b_op]
        if norm:
            in_specs += [pl.BlockSpec((1, Dp), lambda i: (0, 0), **const_kw),
                         pl.BlockSpec((1, Dp), lambda i: (0, 0), **const_kw)]
            operands += [g_op, bt_op]
            if pack > 1:
                in_specs.append(pl.BlockSpec((Dp, Dp), lambda i: (0, 0), **const_kw))
                operands.append(ones_op)
        in_specs.append(pl.BlockSpec((tm, Dp), lambda i: (i, 0)))          # x rows
        operands.append(xp)

        call = pl.pallas_call(
            kernel,
            out_shape=jax.ShapeDtypeStruct((Mp_pad, Dp), x.dtype),
            grid_spec=pltpu.PrefetchScalarGridSpec(
                num_scalar_prefetch=0,
                grid=(Mp_pad // tm,),
                in_specs=in_specs,
                out_specs=pl.BlockSpec((tm, Dp), lambda i: (i, 0)),
            ),
            compiler_params=pltpu.CompilerParams(
                dimension_semantics=("parallel",),
                vmem_limit_bytes=vmem_limit,
            ),
        )
        return call(*operands)

    try:
        out_p = _run(True)                         # single-buffered constant blocks
    except Exception:
        out_p = _run(False)                        # fallback: default buffering

    out2 = out_p.reshape(M_rows, d_seg)[:M, :D]
    return out2.reshape(B, N, D)


def lateral_block_ref(x, weights, biases, *, activation="Tanh", norm=False,
                      gamma=None, beta=None):
    """Pure-JAX reference mirroring the PyTorch forward (f32 math)."""
    h = x.astype(jnp.float32)
    x0 = h
    for l in range(weights.shape[0]):
        h = h @ weights[l].astype(jnp.float32).T + biases[l].astype(jnp.float32)
        if activation == "Tanh":
            h = jnp.tanh(h)
        else:
            h = jnp.where(h >= 0, h, 0.01 * h)
        if norm:
            mean = jnp.mean(h, axis=-1, keepdims=True)
            var = jnp.mean((h - mean) ** 2, axis=-1, keepdims=True)
            h = (h - mean) * jax.lax.rsqrt(var + 1e-5)
            h = h * gamma.astype(jnp.float32) + beta.astype(jnp.float32)
    return (h + x0).astype(x.dtype)


if __name__ == "__main__":
    key = jax.random.PRNGKey(0)
    B, N, D = 2, 8, 32
    bound = 1.0 / jnp.sqrt(jnp.float32(D))

    # --- test 1: default module config (skip=0, Tanh, norm=False), f32 ----------
    k1, k2, k3, key = jax.random.split(key, 4)
    x = jax.random.normal(k1, (B, N, D), dtype=jnp.float32)
    w = jax.random.uniform(k2, (1, D, D), jnp.float32, -bound, bound)
    b = jax.random.uniform(k3, (1, D), jnp.float32, -bound, bound)
    out = jax.block_until_ready(lateral_block(x, w, b, activation="Tanh"))
    ref = lateral_block_ref(x, w, b, activation="Tanh")
    assert out.shape == (B, N, D)
    assert jnp.allclose(out, ref, atol=1e-5, rtol=1e-5), "mismatch (Tanh, f32)"

    # --- test 2: skip=1 (2 layers), LeakyReLU, norm=True (packed segmented LN) --
    k1, k2, k3, k4, k5, key = jax.random.split(key, 6)
    x2 = jax.random.normal(k1, (B, N, D), dtype=jnp.float32)
    w2 = jax.random.uniform(k2, (2, D, D), jnp.float32, -bound, bound)
    b2 = jax.random.uniform(k3, (2, D), jnp.float32, -bound, bound)
    gamma = 1.0 + 0.1 * jax.random.normal(k4, (D,), dtype=jnp.float32)
    beta = 0.1 * jax.random.normal(k5, (D,), dtype=jnp.float32)
    out2 = jax.block_until_ready(
        lateral_block(x2, w2, b2, activation="LeakyReLU", norm=True,
                      gamma=gamma, beta=beta))
    ref2 = lateral_block_ref(x2, w2, b2, activation="LeakyReLU", norm=True,
                             gamma=gamma, beta=beta)
    assert jnp.allclose(out2, ref2, atol=1e-5, rtol=1e-5), "mismatch (norm path)"

    # --- test 3: bf16 I/O + bf16 MXU operands (f32 accumulation) ----------------
    xb = x.astype(jnp.bfloat16)
    wb = w.astype(jnp.bfloat16)
    bb = b.astype(jnp.bfloat16)
    out3 = jax.block_until_ready(lateral_block(xb, wb, bb, activation="Tanh"))
    ref3 = lateral_block_ref(xb, wb, bb, activation="Tanh")
    assert jnp.allclose(out3.astype(jnp.float32), ref3.astype(jnp.float32),
                        atol=5e-2, rtol=5e-2), "mismatch (bf16)"

    # --- test 4: D=48 (128 % D != 0) -> feature-padded packing, norm=False ------
    D4 = 48
    bound4 = 1.0 / jnp.sqrt(jnp.float32(D4))
    k1, k2, k3, key = jax.random.split(key, 4)
    x4 = jax.random.normal(k1, (B, N, D4), dtype=jnp.float32)
    w4 = jax.random.uniform(k2, (2, D4, D4), jnp.float32, -bound4, bound4)
    b4 = jax.random.uniform(k3, (2, D4), jnp.float32, -bound4, bound4)
    out4 = jax.block_until_ready(lateral_block(x4, w4, b4, activation="Tanh"))
    ref4 = lateral_block_ref(x4, w4, b4, activation="Tanh")
    assert jnp.allclose(out4, ref4, atol=1e-5, rtol=1e-5), "mismatch (D=48)"

    # --- test 5: D=48 with norm=True (masked segmented LayerNorm) ---------------
    k1, k2, k3, k4, k5, key = jax.random.split(key, 6)
    x5 = jax.random.normal(k1, (B, N, D4), dtype=jnp.float32)
    w5 = jax.random.uniform(k2, (1, D4, D4), jnp.float32, -bound4, bound4)
    b5 = jax.random.uniform(k3, (1, D4), jnp.float32, -bound4, bound4)
    g5 = 1.0 + 0.1 * jax.random.normal(k4, (D4,), dtype=jnp.float32)
    bt5 = 0.1 * jax.random.normal(k5, (D4,), dtype=jnp.float32)
    out5 = jax.block_until_ready(
        lateral_block(x5, w5, b5, activation="LeakyReLU", norm=True,
                      gamma=g5, beta=bt5))
    ref5 = lateral_block_ref(x5, w5, b5, activation="LeakyReLU", norm=True,
                             gamma=g5, beta=bt5)
    assert jnp.allclose(out5, ref5, atol=1e-5, rtol=1e-5), "mismatch (D=48 norm)"

    print("KERNEL_OK")
</pallas_src>

<mosaic_0001>
module attributes {stable_mosaic.version = 11 : i64} {
  func.func @_lateral_kernel(%arg0: i32, %arg1: memref<1x128x128xf32, #tpu.memory_space<vmem>>, %arg2: memref<1x1x128xf32, #tpu.memory_space<vmem>>, %arg3: memref<8x128xf32, #tpu.memory_space<vmem>>, %arg4: memref<8x128xf32, #tpu.memory_space<vmem>>) attributes {dimension_semantics = [#tpu.dimension_semantics<parallel>], iteration_bounds = array<i64: 1>, scalar_prefetch = 0 : i64, scratch_operands = 0 : i64, tpu.core_type = #tpu.core_type<tc>, window_params = [{pipeline_mode = #tpu.pipeline_mode<synchronous>, transform_indices = @transform_0, window_bounds = array<i64: 1, 128, 128>}, {pipeline_mode = #tpu.pipeline_mode<synchronous>, transform_indices = @transform_1, window_bounds = array<i64: 1, 1, 128>}, {transform_indices = @transform_2, window_bounds = array<i64: 8, 128>}, {transform_indices = @transform_3, window_bounds = array<i64: 8, 128>}]} {
    %c0 = arith.constant 0 : index
    %c0_0 = arith.constant 0 : index
    %0 = vector.load %arg3[%c0, %c0_0] : memref<8x128xf32, #tpu.memory_space<vmem>>, vector<8x128xf32>
    %c0_1 = arith.constant 0 : index
    %c0_2 = arith.constant 0 : index
    %c0_3 = arith.constant 0 : index
    %1 = vector.load %arg1[%c0_1, %c0_2, %c0_3] : memref<1x128x128xf32, #tpu.memory_space<vmem>>, vector<1x128x128xf32>
    %2 = vector.shape_cast %1 : vector<1x128x128xf32> to vector<128x128xf32>
    %cst = arith.constant dense<0.000000e+00> : vector<8x128xf32>
    %3 = tpu.matmul %0, %2, %cst {dimension_numbers = #tpu.dot_dimension_numbers<[1], [0], [0], [1], [0, 0, 1, 1], [], []>} : vector<8x128xf32>, vector<128x128xf32>, vector<8x128xf32> -> vector<8x128xf32>
    %c0_4 = arith.constant 0 : index
    %c0_5 = arith.constant 0 : index
    %c0_6 = arith.constant 0 : index
    %4 = vector.load %arg2[%c0_4, %c0_5, %c0_6] : memref<1x1x128xf32, #tpu.memory_space<vmem>>, vector<1x1x128xf32>
    %5 = vector.shape_cast %4 : vector<1x1x128xf32> to vector<1x128xf32>
    %6 = vector.broadcast %5 : vector<1x128xf32> to vector<8x128xf32>
    %7 = arith.addf %3, %6 : vector<8x128xf32>
    %8 = math.tanh %7 : vector<8x128xf32>
    %9 = arith.addf %8, %0 : vector<8x128xf32>
    %c0_7 = arith.constant 0 : index
    %c0_8 = arith.constant 0 : index
    %10 = vector.load %arg4[%c0_7, %c0_8] : memref<8x128xf32, #tpu.memory_space<vmem>>, vector<8x128xf32>
    tpu.vector_store %arg4[%c0_7, %c0_8], %9 {strides = array<i32>} : memref<8x128xf32, #tpu.memory_space<vmem>>, vector<8x128xf32>,
    return
  }
  func.func @transform_0(%arg0: i32) -> (i32, i32, i32) {
    %c0_i32 = arith.constant 0 : i32
    %c0_i32_0 = arith.constant 0 : i32
    %c0_i32_1 = arith.constant 0 : i32
    %c0_i32_2 = arith.constant 0 : i32
    return %c0_i32, %c0_i32_0, %c0_i32_1 : i32, i32, i32
  }
  func.func @transform_1(%arg0: i32) -> (i32, i32, i32) {
    %c0_i32 = arith.constant 0 : i32
    %c0_i32_0 = arith.constant 0 : i32
    %c0_i32_1 = arith.constant 0 : i32
    %c0_i32_2 = arith.constant 0 : i32
    return %c0_i32, %c0_i32_0, %c0_i32_1 : i32, i32, i32
  }
  func.func @transform_2(%arg0: i32) -> (i32, i32) {
    %c0_i32 = arith.constant 0 : i32
    %c0_i32_0 = arith.constant 0 : i32
    return %arg0, %c0_i32 : i32, i32
  }
  func.func @transform_3(%arg0: i32) -> (i32, i32) {
    %c0_i32 = arith.constant 0 : i32
    %c0_i32_0 = arith.constant 0 : i32
    return %arg0, %c0_i32 : i32, i32
  }
}

module attributes {stable_mosaic.version = 11 : i64} {
  func.func @_lateral_kernel(%arg0: i32, %arg1: memref<1x128x128xf32, #tpu.memory_space<vmem>>, %arg2: memref<1x1x128xf32, #tpu.memory_space<vmem>>, %arg3: memref<8x128xf32, #tpu.memory_space<vmem>>, %arg4: memref<8x128xf32, #tpu.memory_space<vmem>>) attributes {dimension_semantics = [#tpu.dimension_semantics<parallel>], iteration_bounds = array<i64: 1>, scalar_prefetch = 0 : i64, scratch_operands = 0 : i64, tpu.core_type = #tpu.core_type<tc>, window_params = [{pipeline_mode = #tpu.pipeline_mode<synchronous>, transform_indices = @transform_0, window_bounds = array<i64: 1, 128, 128>}, {pipeline_mode = #tpu.pipeline_mode<synchronous>, transform_indices = @transform_1, window_bounds = array<i64: 1, 1, 128>}, {transform_indices = @transform_2, window_bounds = array<i64: 8, 128>}, {transform_indices = @transform_3, window_bounds = array<i64: 8, 128>}]} {
    %c0 = arith.constant 0 : index
    %c0_0 = arith.constant 0 : index
    %0 = vector.load %arg3[%c0, %c0_0] : memref<8x128xf32, #tpu.memory_space<vmem>>, vector<8x128xf32>
    %c0_1 = arith.constant 0 : index
    %c0_2 = arith.constant 0 : index
    %c0_3 = arith.constant 0 : index
    %1 = vector.load %arg1[%c0_1, %c0_2, %c0_3] : memref<1x128x128xf32, #tpu.memory_space<vmem>>, vector<1x128x128xf32>
    %2 = vector.shape_cast %1 : vector<1x128x128xf32> to vector<128x128xf32>
    %cst = arith.constant dense<0.000000e+00> : vector<8x128xf32>
    %3 = tpu.matmul %0, %2, %cst {dimension_numbers = #tpu.dot_dimension_numbers<[1], [0], [0], [1], [0, 0, 1, 1], [], []>} : vector<8x128xf32>, vector<128x128xf32>, vector<8x128xf32> -> vector<8x128xf32>
    %c0_4 = arith.constant 0 : index
    %c0_5 = arith.constant 0 : index
    %c0_6 = arith.constant 0 : index
    %4 = vector.load %arg2[%c0_4, %c0_5, %c0_6] : memref<1x1x128xf32, #tpu.memory_space<vmem>>, vector<1x1x128xf32>
    %5 = vector.shape_cast %4 : vector<1x1x128xf32> to vector<1x128xf32>
    %6 = vector.broadcast %5 : vector<1x128xf32> to vector<8x128xf32>
    %7 = arith.addf %3, %6 : vector<8x128xf32>
    %8 = math.tanh %7 : vector<8x128xf32>
    %9 = arith.addf %8, %0 : vector<8x128xf32>
    %c0_7 = arith.constant 0 : index
    %c0_8 = arith.constant 0 : index
    %10 = vector.load %arg4[%c0_7, %c0_8] : memref<8x128xf32, #tpu.memory_space<vmem>>, vector<8x128xf32>
    tpu.vector_store %arg4[%c0_7, %c0_8], %9 {strides = array<i32>} : memref<8x128xf32, #tpu.memory_space<vmem>>, vector<8x128xf32>,
    return
  }
  func.func @transform_0(%arg0: i32) -> (i32, i32, i32) {
    %c0_i32 = arith.constant 0 : i32
    %c0_i32_0 = arith.constant 0 : i32
    %c0_i32_1 = arith.constant 0 : i32
    %c0_i32_2 = arith.constant 0 : i32
    return %c0_i32, %c0_i32_0, %c0_i32_1 : i32, i32, i32
  }
  func.func @transform_1(%arg0: i32) -> (i32, i32, i32) {
    %c0_i32 = arith.constant 0 : i32
    %c0_i32_0 = arith.constant 0 : i32
    %c0_i32_1 = arith.constant 0 : i32
    %c0_i32_2 = arith.constant 0 : i32
    return %c0_i32, %c0_i32_0, %c0_i32_1 : i32, i32, i32
  }
  func.func @transform_2(%arg0: i32) -> (i32, i32) {
    %c0_i32 = arith.constant 0 : i32
    %c0_i32_0 = arith.constant 0 : i32
    return %arg0, %c0_i32 : i32, i32
  }
  func.func @transform_3(%arg0: i32) -> (i32, i32) {
    %c0_i32 = arith.constant 0 : i32
    %c0_i32_0 = arith.constant 0 : i32
    return %arg0, %c0_i32 : i32, i32
  }
}

</mosaic_0001>

<bundles_post_ra>
// kernel: tpu_custom_call.1
= control target key start
LH: loop header
LB: loop body
LE: loop exit
PB: predicated region body
PF: predicated region fallthrough
CT: control target
= control target key end

     0   :  { %8 = vsyncpa [#allocation3], 0  ;;  %s380_s0 = inlined_call_operand.hbm [shape: f32[1,128,128], index: 0, kind: input, shape index: {}]   ;;  %s381_s1 = inlined_call_operand.vmem [shape: f32[1,1,128], index: 1, kind: input, shape index: {}]   ;;  %s382_s2 = inlined_call_operand.hbm [shape: f32[8,128], index: 2, kind: input, shape index: {}]   ;;  %s383_s3 = inlined_call_operand.hbm [shape: f32[8,128], index: 3, kind: output, shape index: {}]  }
   0x1   :  { %9 = vsyncpa [#allocation6], 0 }
   0x2   :  { %10 = vsyncpa [#allocation4], 0  ;;  %s313_s12 = smov [#allocation2]   ;;  %s241_s16 = scalar_lea.hbm %s380_s0, 2048 }
   0x3   :  { %s16_s13 = sshll.u32 %s313_s12, 4  ;;  %p242_p0 = scmp.ne.s32.totalorder %s380_s0, %s241_s16  ;;  %s17_s13 = int_to_ptr.vmem [resolvable:$true] %s16_s13 }
   0x4   :  { %p245_p1 = scmp.lt.u32.totalorder %s241_s16, %s380_s0 }
   0x6   :  { %p247_p2 = pnand %p245_p1, %p242_p0 }
   0x8   :  { %250 = shalt.err (!%p247_p2)
}
   0x9   :  { %s251_s21 = scalar_lea.vmem %s17_s13, 2048  ;;  %p256_p4 = scmp.lt.s32.totalorder %s17_s13, %s17_s13 }
   0xa   :  { %p252_p3 = scmp.ne.s32.totalorder %s17_s13, %s251_s21  ;;  %p257_p5 = scmp.lt.s32.totalorder %s251_s21, %s251_s21 }
   0xc   :  { %p258_p6 = por %p257_p5, %p256_p4 }
   0xe   :  { %p259_p7 = pnand %p258_p6, %p252_p3 }
  0x10   :  { %262 = shalt.err (!%p259_p7)
}
  0x11   :  { %s314_s22 = smov 128   ;;  %s315_s23 = smov 8  }
  0x12   :  { %22 = dma.hbm_to_vmem [thread:$0]  %s380_s0, 2048, %s17_s13, [#allocation3], %s314_s22, %s314_s22, %s315_s23  }
  0x13   :  { %s316_s26 = smov [#allocation5]   ;;  %s263_s30 = scalar_lea.hbm %s382_s2, 128 }
  0x14   :  { %s31_s27 = sshll.u32 %s316_s26, 4  ;;  %p264_p8 = scmp.ne.s32.totalorder %s382_s2, %s263_s30  ;;  %s32_s27 = int_to_ptr.vmem [resolvable:$true] %s31_s27 }
  0x15   :  { %p267_p9 = scmp.lt.u32.totalorder %s263_s30, %s382_s2 }
  0x17   :  { %p269_p10 = pnand %p267_p9, %p264_p8 }
  0x19   :  { %272 = shalt.err (!%p269_p10)
}
  0x1a   :  { %s273_s8 = scalar_lea.vmem %s32_s27, 128  ;;  %p278_p12 = scmp.lt.s32.totalorder %s32_s27, %s32_s27 }
  0x1b   :  { %p274_p11 = scmp.ne.s32.totalorder %s32_s27, %s273_s8  ;;  %p279_p13 = scmp.lt.s32.totalorder %s273_s8, %s273_s8 }
  0x1d   :  { %p280_p0 = por %p279_p13, %p278_p12 }
  0x1f   :  { %p281_p1 = pnand %p280_p0, %p274_p11 }
  0x21   :  { %284 = shalt.err (!%p281_p1)
}
  0x22   :  { %34 = dma.hbm_to_vmem [thread:$0]  %s382_s2, 128, %s32_s27, [#allocation6]  }
  0x23   :  { %307 = dma.done.wait [#allocation3], 2048  }
  0x24   :  { %308 = vsyncadd [#allocation3], 4294965248 }
  0x25   :  { %309 = dma.done.wait [#allocation6], 128  }
  0x26   :  { %310 = vsyncadd [#allocation6], 4294967168  ;;  %v317_v0 = vmov 0.0|0.0   ;;  %vm318_vm0 = vmmov 0   ;;  %v319_v1 = vmov 0.0   ;;  %v42_v2 = vld [vmem:[#allocation2] sm:$0xff] }
  0x27   :  { %207 = vmatprep.subr.bf16.mxu0 %v317_v0  ;;  %204 = vmatprep.mubr.msk.f32.mxu0 %vm318_vm0, %v319_v1  ;;  %v43_v3 = vld [vmem:[#allocation2 + $0x8] sm:$0xff]  ;;  %v44_v4 = vld [vmem:[#allocation2 + $0x10] sm:$0xff]  ;;  %v45_v6 = vld [vmem:[#allocation2 + $0x18] sm:$0xff]  ;;  %s320_s11 = smov [#allocation7]  }
  0x28   :  { %v208_v5 = vpack.c.bf16 %v43_v3, %v42_v2  ;;  %v211_v7 = vpack.c.bf16 %v45_v6, %v44_v4  ;;  %v46_v8 = vld [vmem:[#allocation2 + $0x20] sm:$0xff]  ;;  %v47_v9 = vld [vmem:[#allocation2 + $0x28] sm:$0xff]  ;;  %v48_v11 = vld [vmem:[#allocation2 + $0x30] sm:$0xff]  ;;  %s144_s12 = sshll.u32 %s320_s11, 4  ;;  %s145_s12 = int_to_ptr.vmem [resolvable:$true] %s144_s12 }
  0x29   :  { %v214_v10 = vpack.c.bf16 %v47_v9, %v46_v8  ;;  %v49_v12 = vld [vmem:[#allocation2 + $0x38] sm:$0xff]  ;;  %v50_v14 = vld [vmem:[#allocation2 + $0x40] sm:$0xff]  ;;  %v51_v15 = vld [vmem:[#allocation2 + $0x48] sm:$0xff]  ;;  %s285_s13 = scalar_lea.vmem %s145_s12, 128  ;;  %p290_p3 = scmp.lt.s32.totalorder %s145_s12, %s145_s12 }
  0x2a   :  { %209 = vmatpush3.bf16.msra.mxu0 %v208_v5  ;;  %v217_v13 = vpack.c.bf16 %v49_v12, %v48_v11  ;;  %v220_v16 = vpack.c.bf16 %v51_v15, %v50_v14  ;;  %v52_v17 = vld [vmem:[#allocation2 + $0x50] sm:$0xff]  ;;  %v53_v18 = vld [vmem:[#allocation2 + $0x58] sm:$0xff]  ;;  %v54_v20 = vld [vmem:[#allocation2 + $0x60] sm:$0xff]  ;;  %p286_p2 = scmp.ne.s32.totalorder %s145_s12, %s285_s13  ;;  %p291_p4 = scmp.lt.s32.totalorder %s285_s13, %s285_s13 }
  0x2b   :  { %210 = vmatprep.subr.bf16.mxu0 %v317_v0  ;;  %v223_v19 = vpack.c.bf16 %v53_v18, %v52_v17  ;;  %v55_v21 = vld [vmem:[#allocation2 + $0x68] sm:$0xff]  ;;  %v56_v23 = vld [vmem:[#allocation2 + $0x70] sm:$0xff]  ;;  %v57_v24 = vld [vmem:[#allocation2 + $0x78] sm:$0xff] }
  0x2c   :  { %v226_v22 = vpack.c.bf16 %v55_v21, %v54_v20  ;;  %v229_v25 = vpack.c.bf16 %v57_v24, %v56_v23  ;;  %v41_v26 = vld [vmem:[#allocation5] sm:$0xff]  ;;  %p292_p5 = por %p291_p4, %p290_p3 }
  0x2d   :  { %v154_v27 = vld [vmem:[%s381_s1] ss:$0 sm:$0xff] }
  0x2e   :  { %212 = vmatpush3.bf16.msra.mxu0 %v211_v7  ;;  %p293_p6 = pnand %p292_p5, %p286_p2 }
  0x2f   :  { %213 = vmatprep.subr.bf16.mxu0 %v317_v0 }
  0x32   :  { %215 = vmatpush3.bf16.msra.mxu0 %v214_v10 }
  0x33   :  { %216 = vmatprep.subr.bf16.mxu0 %v317_v0 }
  0x36   :  { %218 = vmatpush3.bf16.msra.mxu0 %v217_v13 }
  0x37   :  { %219 = vmatprep.subr.bf16.mxu0 %v317_v0 }
  0x3a   :  { %221 = vmatpush3.bf16.msra.mxu0 %v220_v16 }
  0x3b   :  { %222 = vmatprep.subr.bf16.mxu0 %v317_v0 }
  0x3e   :  { %224 = vmatpush3.bf16.msra.mxu0 %v223_v19 }
  0x3f   :  { %225 = vmatprep.subr.bf16.mxu0 %v317_v0 }
  0x42   :  { %227 = vmatpush3.bf16.msra.mxu0 %v226_v22 }
  0x43   :  { %228 = vmatprep.subr.bf16.mxu0 %v317_v0 }
  0x46   :  { %230 = vmatpush3.bf16.msra.mxu0 %v229_v25 }
  0x49   :  { %205 = vmatmul.mubr.f32.vlgmr.msra.gmra.mrb[0].mxu0 %v41_v26 }
 0x11c   :  { %v131_v28 = vpop.f32.mrb[0].mxu0 }
 0x11d   :  { %v132_v29 = vadd.f32 %v154_v27, %v131_v28  ;;  %v206_v30 = vpop.f32.mrb[1].mxu0 }
 0x11f   :  { %239 = vtanh.f32 %v132_v29 }
 0x129   :  { %v240_v31 = vpop.eup %239 }
 0x12a   :  { %v136_v32 = vadd.f32 %v240_v31, %v41_v26 }
 0x12c   :  { %137 = vst [vmem:[#allocation7] sm:$0xff] %v136_v32 }
 0x12d   :  { %296 = shalt.err (!%p293_p6)
}
 0x12e   :  { %s297_s1 = scalar_lea.hbm %s383_s3, 128 }
 0x12f   :  { %p298_p7 = scmp.ne.s32.totalorder %s383_s3, %s297_s1  ;;  %p301_p8 = scmp.lt.u32.totalorder %s297_s1, %s383_s3 }
 0x131   :  { %p303_p9 = pnand %p301_p8, %p298_p7 }
 0x133   :  { %306 = shalt.err (!%p303_p9)
}
 0x134   :  { %147 = dma.vmem_to_hbm [thread:$0]  %s145_s12, 128, %s383_s3, [#allocation4]  }
 0x135   :  { %311 = dma.done.wait [#allocation4], 128  }
 0x136   :  { %312 = vsyncadd [#allocation4], 4294967168 }
 0x137   :  { %151 = vsyncpa [#allocation3], 1 }
 0x138   :  { %152 = vsyncpa [#allocation6], 1 }
 0x139   :  { %153 = vsyncpa [#allocation4], 1 }

// kernel: tpu_custom_call.1
= control target key start
LH: loop header
LB: loop body
LE: loop exit
PB: predicated region body
PF: predicated region fallthrough
CT: control target
= control target key end

     0   :  { %8 = vsyncpa [#allocation3], 0  ;;  %s380_s0 = inlined_call_operand.hbm [shape: f32[1,128,128], index: 0, kind: input, shape index: {}]   ;;  %s381_s1 = inlined_call_operand.vmem [shape: f32[1,1,128], index: 1, kind: input, shape index: {}]   ;;  %s382_s2 = inlined_call_operand.hbm [shape: f32[8,128], index: 2, kind: input, shape index: {}]   ;;  %s383_s3 = inlined_call_operand.hbm [shape: f32[8,128], index: 3, kind: output, shape index: {}]  }
   0x1   :  { %9 = vsyncpa [#allocation6], 0 }
   0x2   :  { %10 = vsyncpa [#allocation4], 0  ;;  %s313_s12 = smov [#allocation2]   ;;  %s241_s16 = scalar_lea.hbm %s380_s0, 2048 }
   0x3   :  { %s16_s13 = sshll.u32 %s313_s12, 4  ;;  %p242_p0 = scmp.ne.s32.totalorder %s380_s0, %s241_s16  ;;  %s17_s13 = int_to_ptr.vmem [resolvable:$true] %s16_s13 }
   0x4   :  { %p245_p1 = scmp.lt.u32.totalorder %s241_s16, %s380_s0 }
   0x6   :  { %p247_p2 = pnand %p245_p1, %p242_p0 }
   0x8   :  { %250 = shalt.err (!%p247_p2)
}
   0x9   :  { %s251_s21 = scalar_lea.vmem %s17_s13, 2048  ;;  %p256_p4 = scmp.lt.s32.totalorder %s17_s13, %s17_s13 }
   0xa   :  { %p252_p3 = scmp.ne.s32.totalorder %s17_s13, %s251_s21  ;;  %p257_p5 = scmp.lt.s32.totalorder %s251_s21, %s251_s21 }
   0xc   :  { %p258_p6 = por %p257_p5, %p256_p4 }
   0xe   :  { %p259_p7 = pnand %p258_p6, %p252_p3 }
  0x10   :  { %262 = shalt.err (!%p259_p7)
}
  0x11   :  { %s314_s22 = smov 128   ;;  %s315_s23 = smov 8  }
  0x12   :  { %22 = dma.hbm_to_vmem [thread:$0]  %s380_s0, 2048, %s17_s13, [#allocation3], %s314_s22, %s314_s22, %s315_s23  }
  0x13   :  { %s316_s26 = smov [#allocation5]   ;;  %s263_s30 = scalar_lea.hbm %s382_s2, 128 }
  0x14   :  { %s31_s27 = sshll.u32 %s316_s26, 4  ;;  %p264_p8 = scmp.ne.s32.totalorder %s382_s2, %s263_s30  ;;  %s32_s27 = int_to_ptr.vmem [resolvable:$true] %s31_s27 }
  0x15   :  { %p267_p9 = scmp.lt.u32.totalorder %s263_s30, %s382_s2 }
  0x17   :  { %p269_p10 = pnand %p267_p9, %p264_p8 }
  0x19   :  { %272 = shalt.err (!%p269_p10)
}
  0x1a   :  { %s273_s8 = scalar_lea.vmem %s32_s27, 128  ;;  %p278_p12 = scmp.lt.s32.totalorder %s32_s27, %s32_s27 }
  0x1b   :  { %p274_p11 = scmp.ne.s32.totalorder %s32_s27, %s273_s8  ;;  %p279_p13 = scmp.lt.s32.totalorder %s273_s8, %s273_s8 }
  0x1d   :  { %p280_p0 = por %p279_p13, %p278_p12 }
  0x1f   :  { %p281_p1 = pnand %p280_p0, %p274_p11 }
  0x21   :  { %284 = shalt.err (!%p281_p1)
}
  0x22   :  { %34 = dma.hbm_to_vmem [thread:$0]  %s382_s2, 128, %s32_s27, [#allocation6]  }
  0x23   :  { %307 = dma.done.wait [#allocation3], 2048  }
  0x24   :  { %308 = vsyncadd [#allocation3], 4294965248 }
  0x25   :  { %309 = dma.done.wait [#allocation6], 128  }
  0x26   :  { %310 = vsyncadd [#allocation6], 4294967168  ;;  %v317_v0 = vmov 0.0|0.0   ;;  %vm318_vm0 = vmmov 0   ;;  %v319_v1 = vmov 0.0   ;;  %v42_v2 = vld [vmem:[#allocation2] sm:$0xff] }
  0x27   :  { %207 = vmatprep.subr.bf16.mxu0 %v317_v0  ;;  %204 = vmatprep.mubr.msk.f32.mxu0 %vm318_vm0, %v319_v1  ;;  %v43_v3 = vld [vmem:[#allocation2 + $0x8] sm:$0xff]  ;;  %v44_v4 = vld [vmem:[#allocation2 + $0x10] sm:$0xff]  ;;  %v45_v6 = vld [vmem:[#allocation2 + $0x18] sm:$0xff]  ;;  %s320_s11 = smov [#allocation7]  }
  0x28   :  { %v208_v5 = vpack.c.bf16 %v43_v3, %v42_v2  ;;  %v211_v7 = vpack.c.bf16 %v45_v6, %v44_v4  ;;  %v46_v8 = vld [vmem:[#allocation2 + $0x20] sm:$0xff]  ;;  %v47_v9 = vld [vmem:[#allocation2 + $0x28] sm:$0xff]  ;;  %v48_v11 = vld [vmem:[#allocation2 + $0x30] sm:$0xff]  ;;  %s144_s12 = sshll.u32 %s320_s11, 4  ;;  %s145_s12 = int_to_ptr.vmem [resolvable:$true] %s144_s12 }
  0x29   :  { %v214_v10 = vpack.c.bf16 %v47_v9, %v46_v8  ;;  %v49_v12 = vld [vmem:[#allocation2 + $0x38] sm:$0xff]  ;;  %v50_v14 = vld [vmem:[#allocation2 + $0x40] sm:$0xff]  ;;  %v51_v15 = vld [vmem:[#allocation2 + $0x48] sm:$0xff]  ;;  %s285_s13 = scalar_lea.vmem %s145_s12, 128  ;;  %p290_p3 = scmp.lt.s32.totalorder %s145_s12, %s145_s12 }
  0x2a   :  { %209 = vmatpush3.bf16.msra.mxu0 %v208_v5  ;;  %v217_v13 = vpack.c.bf16 %v49_v12, %v48_v11  ;;  %v220_v16 = vpack.c.bf16 %v51_v15, %v50_v14  ;;  %v52_v17 = vld [vmem:[#allocation2 + $0x50] sm:$0xff]  ;;  %v53_v18 = vld [vmem:[#allocation2 + $0x58] sm:$0xff]  ;;  %v54_v20 = vld [vmem:[#allocation2 + $0x60] sm:$0xff]  ;;  %p286_p2 = scmp.ne.s32.totalorder %s145_s12, %s285_s13  ;;  %p291_p4 = scmp.lt.s32.totalorder %s285_s13, %s285_s13 }
  0x2b   :  { %210 = vmatprep.subr.bf16.mxu0 %v317_v0  ;;  %v223_v19 = vpack.c.bf16 %v53_v18, %v52_v17  ;;  %v55_v21 = vld [vmem:[#allocation2 + $0x68] sm:$0xff]  ;;  %v56_v23 = vld [vmem:[#allocation2 + $0x70] sm:$0xff]  ;;  %v57_v24 = vld [vmem:[#allocation2 + $0x78] sm:$0xff] }
  0x2c   :  { %v226_v22 = vpack.c.bf16 %v55_v21, %v54_v20  ;;  %v229_v25 = vpack.c.bf16 %v57_v24, %v56_v23  ;;  %v41_v26 = vld [vmem:[#allocation5] sm:$0xff]  ;;  %p292_p5 = por %p291_p4, %p290_p3 }
  0x2d   :  { %v154_v27 = vld [vmem:[%s381_s1] ss:$0 sm:$0xff] }
  0x2e   :  { %212 = vmatpush3.bf16.msra.mxu0 %v211_v7  ;;  %p293_p6 = pnand %p292_p5, %p286_p2 }
  0x2f   :  { %213 = vmatprep.subr.bf16.mxu0 %v317_v0 }
  0x32   :  { %215 = vmatpush3.bf16.msra.mxu0 %v214_v10 }
  0x33   :  { %216 = vmatprep.subr.bf16.mxu0 %v317_v0 }
  0x36   :  { %218 = vmatpush3.bf16.msra.mxu0 %v217_v13 }
  0x37   :  { %219 = vmatprep.subr.bf16.mxu0 %v317_v0 }
  0x3a   :  { %221 = vmatpush3.bf16.msra.mxu0 %v220_v16 }
  0x3b   :  { %222 = vmatprep.subr.bf16.mxu0 %v317_v0 }
  0x3e   :  { %224 = vmatpush3.bf16.msra.mxu0 %v223_v19 }
  0x3f   :  { %225 = vmatprep.subr.bf16.mxu0 %v317_v0 }
  0x42   :  { %227 = vmatpush3.bf16.msra.mxu0 %v226_v22 }
  0x43   :  { %228 = vmatprep.subr.bf16.mxu0 %v317_v0 }
  0x46   :  { %230 = vmatpush3.bf16.msra.mxu0 %v229_v25 }
  0x49   :  { %205 = vmatmul.mubr.f32.vlgmr.msra.gmra.mrb[0].mxu0 %v41_v26 }
 0x11c   :  { %v131_v28 = vpop.f32.mrb[0].mxu0 }
 0x11d   :  { %v132_v29 = vadd.f32 %v154_v27, %v131_v28  ;;  %v206_v30 = vpop.f32.mrb[1].mxu0 }
 0x11f   :  { %239 = vtanh.f32 %v132_v29 }
 0x129   :  { %v240_v31 = vpop.eup %239 }
 0x12a   :  { %v136_v32 = vadd.f32 %v240_v31, %v41_v26 }
 0x12c   :  { %137 = vst [vmem:[#allocation7] sm:$0xff] %v136_v32 }
 0x12d   :  { %296 = shalt.err (!%p293_p6)
}
 0x12e   :  { %s297_s1 = scalar_lea.hbm %s383_s3, 128 }
 0x12f   :  { %p298_p7 = scmp.ne.s32.totalorder %s383_s3, %s297_s1  ;;  %p301_p8 = scmp.lt.u32.totalorder %s297_s1, %s383_s3 }
 0x131   :  { %p303_p9 = pnand %p301_p8, %p298_p7 }
 0x133   :  { %306 = shalt.err (!%p303_p9)
}
 0x134   :  { %147 = dma.vmem_to_hbm [thread:$0]  %s145_s12, 128, %s383_s3, [#allocation4]  }
 0x135   :  { %311 = dma.done.wait [#allocation4], 128  }
 0x136   :  { %312 = vsyncadd [#allocation4], 4294967168 }
 0x137   :  { %151 = vsyncpa [#allocation3], 1 }
 0x138   :  { %152 = vsyncpa [#allocation6], 1 }
 0x139   :  { %153 = vsyncpa [#allocation4], 1 }

</bundles_post_ra>
